<compile_context>
chip_gen: v7x
topology: tpu7x:2x2x1
jax: 0.10.0
libtpu: 0.0.40
codegen_flags: <defaults>
</compile_context>

<pallas_src>
import functools

import jax
import jax.numpy as jnp
from jax.experimental import pallas as pl
from jax.experimental.pallas import tpu as pltpu


def sparsemax_partial_kernel(preds_ref, labels_ref, loss_ref, cnt_ref, *, k_sparse):
    p = preds_ref[...].astype(jnp.float32)              # [TB, N] (cast after load)
    tb, n = p.shape
    labels = labels_ref[...]                             # [TB, 1] int32

    valid = labels != -100                                # ignore-index mask
    safe_labels = jnp.where(valid, labels, 0)             # labels[~mask] = 0
    lane = jax.lax.broadcasted_iota(jnp.int32, (tb, n), 1)

    # neg_loss[b] = p[b, labels[b]]  (one-hot select + lane reduce == torch.gather)
    neg_loss = jnp.sum(jnp.where(lane == safe_labels, p, 0.0), axis=1, keepdims=True)

    # pos_loss[b] = logsumexp(top_k(p[b], k_sparse))
    m = jnp.max(p, axis=1, keepdims=True)                 # top-1 / logsumexp shift
    if k_sparse <= 1:
        # Fast path (default): logsumexp of a single value is the value itself.
        pos_loss = m
    else:
        # Hoisted first iteration: top-1 contributes exp(m - m) == 1.
        s = jnp.ones_like(m)
        prev = m
        excl = None                                        # lanes already consumed
        for _ in range(k_sparse - 1):                      # k_sparse is small & static
            # first not-yet-taken occurrence of the previous top value
            cand = (p == prev) if excl is None else jnp.logical_and(
                p == prev, jnp.logical_not(excl))
            idx = jnp.min(jnp.where(cand, lane, n), axis=1, keepdims=True)
            hit = lane == idx
            excl = hit if excl is None else jnp.logical_or(excl, hit)
            # next largest value among the remaining lanes
            cur = jnp.max(jnp.where(excl, -jnp.inf, p), axis=1, keepdims=True)
            s = s + jnp.exp(cur - m)                       # exp(-inf)=0 if k > N
            prev = cur
        pos_loss = m + jnp.log(s)

    mask_f = valid.astype(jnp.float32)
    row_loss = (pos_loss - neg_loss) * mask_f              # [TB, 1]

    partial_loss = jnp.sum(row_loss)                       # scalars per tile
    partial_cnt = jnp.sum(mask_f)
    # Lane-dense (1, 8, 128) partial outputs -> unmasked full-vreg stores.
    loss_ref[...] = jnp.full(loss_ref.shape, partial_loss, jnp.float32)
    cnt_ref[...] = jnp.full(cnt_ref.shape, partial_cnt, jnp.float32)


def sparsemax_loss(preds, labels, k_sparse=1, tile_batch=None):
    """Pallas equivalent of Sparsemax(k_sparse).forward(preds, labels)."""
    B = preds.shape[0]
    preds2d = preds.reshape(B, -1)                         # keep input dtype on the wire
    N = preds2d.shape[1]
    labels1d = labels.astype(jnp.int32).reshape(B)

    itemsize = jnp.dtype(preds2d.dtype).itemsize
    if tile_batch is None:
        # ~4 MiB per preds tile => <= ~8 MiB double-buffered: fits v5e's 16 MiB
        # scoped-VMEM default and leaves headroom on v7x's 64 MiB VMEM.
        rows = (4 * 1024 * 1024) // max(1, N * itemsize)
        tb = int(max(8, min(512, (rows // 8) * 8)))
    else:
        tb = int(max(8, (int(tile_batch) // 8) * 8))
    b8 = ((B + 7) // 8) * 8
    if b8 <= tb:
        tb = b8
    b_pad = ((B + tb - 1) // tb) * tb
    num_tiles = b_pad // tb

    # Pad the batch: padded rows get label -100 so they contribute nothing.
    if b_pad != B:
        preds2d = jnp.pad(preds2d, ((0, b_pad - B), (0, 0)))
        labels1d = jnp.pad(labels1d, (0, b_pad - B), constant_values=-100)
    labels2d = labels1d[:, None]                           # [B_pad, 1]

    part_loss, part_cnt = pl.pallas_call(
        functools.partial(sparsemax_partial_kernel, k_sparse=int(k_sparse)),
        out_shape=(
            jax.ShapeDtypeStruct((num_tiles, 8, 128), jnp.float32),
            jax.ShapeDtypeStruct((num_tiles, 8, 128), jnp.float32),
        ),
        grid=(num_tiles,),
        in_specs=[
            pl.BlockSpec((tb, N), lambda i: (i, 0)),
            pl.BlockSpec((tb, 1), lambda i: (i, 0)),
        ],
        out_specs=(
            pl.BlockSpec((1, 8, 128), lambda i: (i, 0, 0)),
            pl.BlockSpec((1, 8, 128), lambda i: (i, 0, 0)),
        ),
        compiler_params=pltpu.CompilerParams(
            dimension_semantics=("parallel",)),
    )(preds2d, labels2d)

    loss_sum = jnp.sum(part_loss[:, 0, 0])
    mask_sum = jnp.sum(part_cnt[:, 0, 0])
    return loss_sum / mask_sum                             # NaN if all labels == -100 (same as reference)


def _reference(preds, labels, k_sparse):
    """Pure-JAX reference mirroring the PyTorch module."""
    p = preds.reshape(preds.shape[0], -1).astype(jnp.float32)
    topk = jax.lax.top_k(p, k_sparse)[0]
    pos = jax.scipy.special.logsumexp(topk, axis=1)
    mask = labels != -100
    safe = jnp.where(mask, labels, 0)
    neg = jnp.take_along_axis(p, safe[:, None], axis=1)[:, 0]
    loss = (pos - neg) * mask
    return loss.sum() / mask.sum()


if __name__ == "__main__":
    key = jax.random.PRNGKey(0)
    kp, kl = jax.random.split(key)

    # Case 1: single tile, default-ish shapes.
    B, N = 8, 128
    preds = jax.random.normal(kp, (B, N), dtype=jnp.float32)
    labels = jax.random.randint(kl, (B,), 0, N, dtype=jnp.int32)
    labels = labels.at[3].set(-100)  # exercise ignore-index masking

    for k_sparse in (1, 2):  # k_sparse=1 fast path + general top-k path
        loss = sparsemax_loss(preds, labels, k_sparse=k_sparse)
        jax.block_until_ready(loss)
        ref = _reference(preds, labels, k_sparse)
        assert jnp.allclose(loss, ref, atol=1e-5, rtol=1e-5), (loss, ref, k_sparse)

    # Case 2: multi-tile grid + batch padding (B not multiple of tile, N not multiple of 128).
    kp2, kl2 = jax.random.split(jax.random.PRNGKey(1))
    B2, N2 = 20, 100
    preds2 = jax.random.normal(kp2, (B2, N2), dtype=jnp.float32)
    labels2 = jax.random.randint(kl2, (B2,), 0, N2, dtype=jnp.int32)
    labels2 = labels2.at[0].set(-100)
    for k_sparse in (1, 3):
        loss = sparsemax_loss(preds2, labels2, k_sparse=k_sparse, tile_batch=8)
        jax.block_until_ready(loss)
        ref = _reference(preds2, labels2, k_sparse)
        assert jnp.allclose(loss, ref, atol=1e-5, rtol=1e-5), (loss, ref, k_sparse)

    print("KERNEL_OK")
</pallas_src>

<mosaic_0001>
module attributes {stable_mosaic.version = 11 : i64} {
  func.func @sparsemax_partial_kernel(%arg0: i32, %arg1: memref<8x128xf32, #tpu.memory_space<vmem>>, %arg2: memref<8x1xi32, #tpu.memory_space<vmem>>, %arg3: memref<1x8x128xf32, #tpu.memory_space<vmem>>, %arg4: memref<1x8x128xf32, #tpu.memory_space<vmem>>) attributes {dimension_semantics = [#tpu.dimension_semantics<parallel>], iteration_bounds = array<i64: 1>, scalar_prefetch = 0 : i64, scratch_operands = 0 : i64, tpu.core_type = #tpu.core_type<tc>, window_params = [{transform_indices = @transform_0, window_bounds = array<i64: 8, 128>}, {transform_indices = @transform_1, window_bounds = array<i64: 8, 1>}, {transform_indices = @transform_2, window_bounds = array<i64: 1, 8, 128>}, {transform_indices = @transform_3, window_bounds = array<i64: 1, 8, 128>}]} {
    %c0 = arith.constant 0 : index
    %c0_0 = arith.constant 0 : index
    %0 = vector.load %arg1[%c0, %c0_0] : memref<8x128xf32, #tpu.memory_space<vmem>>, vector<8x128xf32>
    %c0_1 = arith.constant 0 : index
    %c0_2 = arith.constant 0 : index
    %1 = vector.load %arg2[%c0_1, %c0_2] : memref<8x1xi32, #tpu.memory_space<vmem>>, vector<8x1xi32>
    %c-100_i32 = arith.constant -100 : i32
    %2 = vector.broadcast %c-100_i32 : i32 to vector<8x1xi32>
    %3 = arith.cmpi ne, %1, %2 : vector<8x1xi32>
    %c0_i32 = arith.constant 0 : i32
    %4 = vector.broadcast %c0_i32 : i32 to vector<8x1xi32>
    %5 = arith.select %3, %1, %4 : vector<8x1xi1>, vector<8x1xi32>
    %6 = tpu.iota {dimensions = array<i32: 1>} : vector<8x128xi32>
    %7 = vector.broadcast %5 : vector<8x1xi32> to vector<8x128xi32>
    %8 = arith.cmpi eq, %6, %7 : vector<8x128xi32>
    %cst = arith.constant 0.000000e+00 : f32
    %9 = vector.broadcast %cst : f32 to vector<8x128xf32>
    %10 = arith.select %8, %0, %9 : vector<8x128xi1>, vector<8x128xf32>
    %cst_3 = arith.constant dense<0.000000e+00> : vector<8xf32>
    %11 = vector.multi_reduction <add>, %10, %cst_3 [1] : vector<8x128xf32> to vector<8xf32>
    %12 = vector.shape_cast %11 : vector<8xf32> to vector<8x1xf32>
    %cst_4 = arith.constant dense<0xFF800000> : vector<8xf32>
    %13 = vector.multi_reduction <maximumf>, %0, %cst_4 [1] : vector<8x128xf32> to vector<8xf32>
    %14 = vector.shape_cast %13 : vector<8xf32> to vector<8x1xf32>
    %15 = arith.extui %3 : vector<8x1xi1> to vector<8x1xi32>
    %16 = arith.sitofp %15 : vector<8x1xi32> to vector<8x1xf32>
    %17 = arith.subf %14, %12 : vector<8x1xf32>
    %18 = arith.mulf %17, %16 : vector<8x1xf32>
    %19 = vector.shape_cast %18 : vector<8x1xf32> to vector<1x8x1xf32>
    %cst_5 = arith.constant dense<0.000000e+00> : vector<1xf32>
    %20 = vector.multi_reduction <add>, %19, %cst_5 [1, 2] : vector<1x8x1xf32> to vector<1xf32>
    %21 = vector.shape_cast %20 : vector<1xf32> to vector<1x1x1xf32>
    %22 = vector.extract %21[0, 0, 0] : f32 from vector<1x1x1xf32>
    %23 = vector.shape_cast %16 : vector<8x1xf32> to vector<1x8x1xf32>
    %cst_6 = arith.constant dense<0.000000e+00> : vector<1xf32>
    %24 = vector.multi_reduction <add>, %23, %cst_6 [1, 2] : vector<1x8x1xf32> to vector<1xf32>
    %25 = vector.shape_cast %24 : vector<1xf32> to vector<1x1x1xf32>
    %26 = vector.extract %25[0, 0, 0] : f32 from vector<1x1x1xf32>
    %27 = vector.broadcast %22 : f32 to vector<1x8x128xf32>
    %c0_7 = arith.constant 0 : index
    %c0_8 = arith.constant 0 : index
    %c0_9 = arith.constant 0 : index
    %28 = vector.load %arg3[%c0_7, %c0_8, %c0_9] : memref<1x8x128xf32, #tpu.memory_space<vmem>>, vector<1x8x128xf32>
    tpu.vector_store %arg3[%c0_7, %c0_8, %c0_9], %27 {strides = array<i32>} : memref<1x8x128xf32, #tpu.memory_space<vmem>>, vector<1x8x128xf32>,
    %29 = vector.broadcast %26 : f32 to vector<1x8x128xf32>
    %c0_10 = arith.constant 0 : index
    %c0_11 = arith.constant 0 : index
    %c0_12 = arith.constant 0 : index
    %30 = vector.load %arg4[%c0_10, %c0_11, %c0_12] : memref<1x8x128xf32, #tpu.memory_space<vmem>>, vector<1x8x128xf32>
    tpu.vector_store %arg4[%c0_10, %c0_11, %c0_12], %29 {strides = array<i32>} : memref<1x8x128xf32, #tpu.memory_space<vmem>>, vector<1x8x128xf32>,
    return
  }
  func.func @transform_0(%arg0: i32) -> (i32, i32) {
    %c0_i32 = arith.constant 0 : i32
    %c0_i32_0 = arith.constant 0 : i32
    return %arg0, %c0_i32 : i32, i32
  }
  func.func @transform_1(%arg0: i32) -> (i32, i32) {
    %c0_i32 = arith.constant 0 : i32
    %c0_i32_0 = arith.constant 0 : i32
    return %arg0, %c0_i32 : i32, i32
  }
  func.func @transform_2(%arg0: i32) -> (i32, i32, i32) {
    %c0_i32 = arith.constant 0 : i32
    %c0_i32_0 = arith.constant 0 : i32
    %c0_i32_1 = arith.constant 0 : i32
    return %arg0, %c0_i32, %c0_i32_0 : i32, i32, i32
  }
  func.func @transform_3(%arg0: i32) -> (i32, i32, i32) {
    %c0_i32 = arith.constant 0 : i32
    %c0_i32_0 = arith.constant 0 : i32
    %c0_i32_1 = arith.constant 0 : i32
    return %arg0, %c0_i32, %c0_i32_0 : i32, i32, i32
  }
}

</mosaic_0001>

<bundles_post_ra>
// kernel: tpu_custom_call.1
= control target key start
LH: loop header
LB: loop body
LE: loop exit
PB: predicated region body
PF: predicated region fallthrough
CT: control target
= control target key end

     0   :  { %9 = vsyncpa [#allocation3], 0  ;;  %s199_s0 = inlined_call_operand.vmem [shape: f32[8,128], index: 0, kind: input, shape index: {}]   ;;  %s200_s1 = inlined_call_operand.vmem [shape: s32[8,1], index: 1, kind: input, shape index: {}]   ;;  %s201_s2 = inlined_call_operand.hbm [shape: f32[1,8,128], index: 2, kind: output, shape index: {0}]   ;;  %s202_s3 = inlined_call_operand.hbm [shape: f32[1,8,128], index: 3, kind: output, shape index: {1}]  }
   0x1   :  { %v16_v0 = vld [vmem:[%s200_s1] sm:$0xff] }
   0x2   :  { %10 = vsyncpa [#allocation5], 0  ;;  %v145_v1 = vmov 0   ;;  %vm17_vm0 = vcmp.ne.s32.totalorder %v16_v0, 4294967196  ;;  %v15_v3 = vld [vmem:[%s199_s0] sm:$0xff]  ;;  %v19_v4 = vlaneseq  ;;  %v146_v9 = vmov 0.0  }
   0x3   :  { %96 = vset.pattern.permute.xlu0 %v145_v1  ;;  %v18_v2 = vsel %vm17_vm0, %v16_v0, 0  ;;  %28 = vmax.xlane.f32.xlu1 %v15_v3  ;;  %v87_v10 = vsel %vm17_vm0, 1.0, %v146_v9  ;;  %vm34_vm2 = vcmask 7168   ;;  %s147_s0 = smov [#allocation2]   ;;  %s148_s17 = smov [#allocation4]  }
   0x4   :  { %22 = vperm.xlu0 %96, %v18_v2   ;;  %v20_v5 = vand.u32 127, %v19_v4  ;;  %v45_v15 = vsel %vm34_vm2, %v87_v10, 0.0  ;;  %s65_s1 = sshll.u32 %s147_s0, 4  ;;  %s75_s18 = sshll.u32 %s148_s17, 4  ;;  %s66_s1 = int_to_ptr.vmem [resolvable:$true] %s65_s1  ;;  %s76_s18 = int_to_ptr.vmem [resolvable:$true] %s75_s18 }
   0x5   :  { %s97_s19 = scalar_lea.vmem %s66_s1, 128  ;;  %p102_p1 = scmp.lt.s32.totalorder %s66_s1, %s66_s1 }
   0x6   :  { %p98_p0 = scmp.ne.s32.totalorder %s66_s1, %s97_s19  ;;  %p103_p2 = scmp.lt.s32.totalorder %s97_s19, %s97_s19 }
   0x8   :  { %p104_p3 = por %p103_p2, %p102_p1 }
   0xa   :  { %p105_p4 = pnand %p104_p3, %p98_p0 }
  0x83   :  { %v23_v6 = vpop.permute.xlu0 %22 }
  0x84   :  { %vm24_vm1 = vcmp.eq.s32.totalorder %v20_v5, %v23_v6 }
  0x85   :  { %v25_v7 = vsel %vm24_vm1, %v15_v3, 0.0 }
  0x86   :  { %26 = vadd.xlane.f32.xlu0 %v25_v7 }
  0x90   :  { %v29_v8 = vpop.xlane.xlu1 %28 }
 0x113   :  { %v27_v11 = vpop.xlane.xlu0 %26 }
 0x114   :  { %v32_v12 = vsub.f32 %v29_v8, %v27_v11 }
 0x116   :  { %v33_v13 = vmul.f32 %v87_v10, %v32_v12 }
 0x118   :  { %v35_v14 = vsel %vm34_vm2, %v33_v13, 0.0 }
 0x119   :  { %36 = vadd.xlane.f32.xlu1 %v35_v14 }
 0x11d   :  { %46 = vadd.xlane.f32.xlu1 %v45_v15 }
 0x1a6   :  { %v37_v16 = vpop.xlane.xlu1 %36 }
 0x1a7   :  { %v38_v17 = vrot.slane %v37_v16, 4 }
 0x1a9   :  { %v39_v18 = vadd.f32 %v38_v17, %v37_v16 }
 0x1aa   :  { %v47_v19 = vpop.xlane.xlu1 %46 }
 0x1ab   :  { %v40_v20 = vrot.slane %v39_v18, 2  ;;  %v48_v21 = vrot.slane %v47_v19, 4 }
 0x1ad   :  { %v49_v22 = vadd.f32 %v48_v21, %v47_v19  ;;  %v41_v23 = vadd.f32 %v40_v20, %v39_v18 }
 0x1af   :  { %v50_v24 = vrot.slane %v49_v22, 2  ;;  %v42_v25 = vrot.slane %v41_v23, 1 }
 0x1b1   :  { %v51_v26 = vadd.f32 %v50_v24, %v49_v22  ;;  %v43_v27 = vadd.f32 %v42_v25, %v41_v23 }
 0x1b3   :  { %88 = vpush %v43_v27  ;;  %v52_v28 = vrot.slane %v51_v26, 1 }
 0x1b5   :  { %v53_v29 = vadd.f32 %v52_v28, %v51_v26 }
 0x1b7   :  { %90 = vpush %v53_v29 }
 0x1e4   :  { %s89_s16 = spop %88 }
 0x1e5   :  { %v55_v30 = vstv %s89_s16 }
 0x1e6   :  { %56 = vst [vmem:[#allocation2] sm:$0xff] %v55_v30 }
 0x1e7   :  { %108 = shalt.err (!%p105_p4)
}
 0x1e8   :  { %s109_s22 = scalar_lea.hbm %s201_s2, 128 }
 0x1e9   :  { %p110_p5 = scmp.ne.s32.totalorder %s201_s2, %s109_s22  ;;  %p113_p6 = scmp.lt.u32.totalorder %s109_s22, %s201_s2 }
 0x1eb   :  { %p115_p7 = pnand %p113_p6, %p110_p5 }
 0x1ed   :  { %118 = shalt.err (!%p115_p7)
}
 0x1ee   :  { %68 = dma.vmem_to_hbm [thread:$0]  %s66_s1, 128, %s201_s2, [#allocation3]  }
 0x1ef   :  { %s91_s29 = spop %90  ;;  %s119_s30 = scalar_lea.vmem %s76_s18, 128 }
 0x1f0   :  { %v57_v31 = vstv %s91_s29  ;;  %p120_p8 = scmp.ne.s32.totalorder %s76_s18, %s119_s30  ;;  %p124_p9 = scmp.lt.s32.totalorder %s76_s18, %s76_s18 }
 0x1f1   :  { %58 = vst [vmem:[#allocation4] sm:$0xff] %v57_v31  ;;  %p125_p10 = scmp.lt.s32.totalorder %s119_s30, %s119_s30 }
 0x1f3   :  { %p126_p11 = por %p125_p10, %p124_p9 }
 0x1f5   :  { %p127_p12 = pnand %p126_p11, %p120_p8 }
 0x1f7   :  { %130 = shalt.err (!%p127_p12)
}
 0x1f8   :  { %s131_s6 = scalar_lea.hbm %s202_s3, 128 }
 0x1f9   :  { %p132_p13 = scmp.ne.s32.totalorder %s202_s3, %s131_s6  ;;  %p135_p0 = scmp.lt.u32.totalorder %s131_s6, %s202_s3 }
 0x1fb   :  { %p137_p1 = pnand %p135_p0, %p132_p13 }
 0x1fd   :  { %140 = shalt.err (!%p137_p1)
}
 0x1fe   :  { %78 = dma.vmem_to_hbm [thread:$0]  %s76_s18, 128, %s202_s3, [#allocation5]  }
 0x1ff   :  { %141 = dma.done.wait [#allocation3], 128  }
 0x200   :  { %142 = vsyncadd [#allocation3], 4294967168 }
 0x201   :  { %143 = dma.done.wait [#allocation5], 128  }
 0x202   :  { %144 = vsyncadd [#allocation5], 4294967168 }
 0x203   :  { %85 = vsyncpa [#allocation3], 1 }
 0x204   :  { %86 = vsyncpa [#allocation5], 1 }

</bundles_post_ra>
